<compile_context>
chip_gen: v6e
topology: v6e:2x2x1
jax: 0.10.0
libtpu: 0.0.40
codegen_flags: <defaults>
</compile_context>

<pallas_src>
import functools

import jax
import jax.numpy as jnp
from jax.experimental import pallas as pl
from jax.experimental.pallas import tpu as pltpu

_LANE = 128  # TPU lane width (last-dim alignment target)


def _round_up(x, m):
    return ((x + m - 1) // m) * m


def _generator_kernel(x_ref,
                      w1_ref, b1_ref,
                      w2_ref, b2_ref,
                      w3_ref, b3_ref,
                      w4_ref, b4_ref,
                      o_ref):
    """Whole 4-layer MLP for one batch tile; all operands resident in VMEM.

    Dots take bf16 operands (MXU-native on v6e/v7x) and accumulate in f32;
    bias-add / ReLU are kept in f32 so v5e's f32-only VPU does no extra casts.
    """
    # layer 1: (tb, 128) @ (128, 128) + (1, 128), ReLU   (K padded 100 -> 128)
    h = jnp.dot(x_ref[...], w1_ref[...],
                preferred_element_type=jnp.float32) + b1_ref[...]
    h = jnp.maximum(h, 0.0)

    # layer 2: (tb, 128) @ (128, 256) + (1, 256), ReLU
    h = jnp.dot(h.astype(jnp.bfloat16), w2_ref[...],
                preferred_element_type=jnp.float32) + b2_ref[...]
    h = jnp.maximum(h, 0.0)

    # layer 3: (tb, 256) @ (256, 512) + (1, 512), ReLU
    h = jnp.dot(h.astype(jnp.bfloat16), w3_ref[...],
                preferred_element_type=jnp.float32) + b3_ref[...]
    h = jnp.maximum(h, 0.0)

    # layer 4: (tb, 512) @ (512, 128) + (1, 128)   (N padded 3 -> 128, no act.)
    y = jnp.dot(h.astype(jnp.bfloat16), w4_ref[...],
                preferred_element_type=jnp.float32) + b4_ref[...]

    o_ref[...] = y.astype(o_ref.dtype)


@functools.partial(jax.jit, static_argnames=("tb",))
def generator_forward(x, params, *, tb=512):
    """x: (B, input_dim) float32.  params: (in,out) weights + (1,out) biases (f32)."""
    B, in_dim = x.shape
    out_dim = params["w4"].shape[1]

    in_pad = _round_up(in_dim, _LANE)    # 100 -> 128
    out_pad = _round_up(out_dim, _LANE)  # 3   -> 128

    # Batch tile: multiple of 8 sublanes, capped by the requested tb so tiny
    # batches collapse to a single grid step instead of being padded to 512.
    tb_eff = min(tb, _round_up(B, 8))
    Bp = _round_up(B, tb_eff)
    grid = (Bp // tb_eff,)

    # ---- layout plumbing in the wrapper (pure XLA, cheap) -------------------
    xp = jnp.pad(x, ((0, Bp - B), (0, in_pad - in_dim))).astype(jnp.bfloat16)

    w1 = jnp.pad(params["w1"], ((0, in_pad - in_dim), (0, 0))).astype(jnp.bfloat16)
    w2 = params["w2"].astype(jnp.bfloat16)
    w3 = params["w3"].astype(jnp.bfloat16)
    w4 = jnp.pad(params["w4"], ((0, 0), (0, out_pad - out_dim))).astype(jnp.bfloat16)
    b1 = params["b1"].astype(jnp.float32)
    b2 = params["b2"].astype(jnp.float32)
    b3 = params["b3"].astype(jnp.float32)
    b4 = jnp.pad(params["b4"], ((0, 0), (0, out_pad - out_dim))).astype(jnp.float32)

    def batch_spec(feat):
        return pl.BlockSpec((tb_eff, feat), lambda i: (i, 0))

    def full_spec(shape):
        # weights / biases: same full block for every grid step (resident)
        return pl.BlockSpec(shape, lambda i: (0, 0))

    in_specs = [
        batch_spec(in_pad),
        full_spec(w1.shape), full_spec(b1.shape),
        full_spec(w2.shape), full_spec(b2.shape),
        full_spec(w3.shape), full_spec(b3.shape),
        full_spec(w4.shape), full_spec(b4.shape),
    ]
    out_spec = batch_spec(out_pad)

    # Explicit VMEM budget: double-buffered in/out tiles + resident weights
    # + f32 intermediate activations, with headroom. Capped at 64 MiB (v7x).
    act_bytes = tb_eff * (in_pad * 2 + out_pad * 4 + (128 + 256 + 512) * 4)
    w_bytes = (w1.size + w2.size + w3.size + w4.size) * 2 \
        + (b1.size + b2.size + b3.size + b4.size) * 4
    vmem_limit = int(min(64 * 1024 * 1024,
                         2 * act_bytes + 2 * w_bytes + (8 << 20)))

    out_padded = pl.pallas_call(
        _generator_kernel,
        out_shape=jax.ShapeDtypeStruct((Bp, out_pad), jnp.float32),
        grid_spec=pltpu.PrefetchScalarGridSpec(
            num_scalar_prefetch=0,
            grid=grid,
            in_specs=in_specs,
            out_specs=out_spec,
        ),
        compiler_params=pltpu.CompilerParams(
            dimension_semantics=("parallel",),
            vmem_limit_bytes=vmem_limit,
        ),
    )(xp, w1, b1, w2, b2, w3, b3, w4, b4)

    return out_padded[:B, :out_dim]


def init_generator_params(key, input_dim=100, output_dim=3):
    """PyTorch-style nn.Linear init (U[-1/sqrt(in), 1/sqrt(in)]).

    Weights stored transposed relative to PyTorch, i.e. (in_features,
    out_features), so every layer is y = x @ W + b.
    """
    dims = [(input_dim, 128), (128, 256), (256, 512), (512, output_dim)]
    params = {}
    for idx, (fan_in, fan_out) in enumerate(dims, start=1):
        key, kw, kb = jax.random.split(key, 3)
        bound = 1.0 / jnp.sqrt(jnp.float32(fan_in))
        params[f"w{idx}"] = jax.random.uniform(
            kw, (fan_in, fan_out), jnp.float32, minval=-bound, maxval=bound)
        params[f"b{idx}"] = jax.random.uniform(
            kb, (1, fan_out), jnp.float32, minval=-bound, maxval=bound)
    return params


def generator_forward_ref(x, params):
    """Plain-JAX f32 reference (matches the PyTorch module semantics)."""
    h = jnp.maximum(x @ params["w1"] + params["b1"], 0.0)
    h = jnp.maximum(h @ params["w2"] + params["b2"], 0.0)
    h = jnp.maximum(h @ params["w3"] + params["b3"], 0.0)
    return h @ params["w4"] + params["b4"]


def generator_forward_ref_bf16(x, params):
    """Reference that mirrors the kernel's bf16-dot / f32-accumulate math."""
    bf = jnp.bfloat16
    h = jnp.dot(x.astype(bf), params["w1"].astype(bf),
                preferred_element_type=jnp.float32) + params["b1"]
    h = jnp.maximum(h, 0.0)
    h = jnp.dot(h.astype(bf), params["w2"].astype(bf),
                preferred_element_type=jnp.float32) + params["b2"]
    h = jnp.maximum(h, 0.0)
    h = jnp.dot(h.astype(bf), params["w3"].astype(bf),
                preferred_element_type=jnp.float32) + params["b3"]
    h = jnp.maximum(h, 0.0)
    return jnp.dot(h.astype(bf), params["w4"].astype(bf),
                   preferred_element_type=jnp.float32) + params["b4"]


if __name__ == "__main__":
    key = jax.random.PRNGKey(0)
    key, kx = jax.random.split(key)

    batch, input_dim, output_dim = 8, 100, 3
    x = jax.random.normal(kx, (batch, input_dim), jnp.float32)
    params = init_generator_params(key, input_dim=input_dim, output_dim=output_dim)

    out = generator_forward(x, params)            # tiny batch -> grid (1,)
    out = jax.block_until_ready(out)

    assert out.shape == (batch, output_dim), out.shape
    ref_match = generator_forward_ref_bf16(x, params)
    ref_f32 = generator_forward_ref(x, params)
    assert jnp.allclose(out, ref_match, atol=2e-3, rtol=2e-3), \
        "mismatch vs bf16-matched reference"
    assert jnp.allclose(out, ref_f32, atol=5e-2, rtol=5e-2), \
        "mismatch vs f32 reference"

    print("KERNEL_OK")
</pallas_src>

<mosaic_0001>
module attributes {stable_mosaic.version = 11 : i64} {
  func.func @_generator_kernel(%arg0: i32, %arg1: memref<8x128xbf16, #tpu.memory_space<vmem>>, %arg2: memref<128x128xbf16, #tpu.memory_space<vmem>>, %arg3: memref<1x128xf32, #tpu.memory_space<vmem>>, %arg4: memref<128x256xbf16, #tpu.memory_space<vmem>>, %arg5: memref<1x256xf32, #tpu.memory_space<vmem>>, %arg6: memref<256x512xbf16, #tpu.memory_space<vmem>>, %arg7: memref<1x512xf32, #tpu.memory_space<vmem>>, %arg8: memref<512x128xbf16, #tpu.memory_space<vmem>>, %arg9: memref<1x128xf32, #tpu.memory_space<vmem>>, %arg10: memref<8x128xf32, #tpu.memory_space<vmem>>) attributes {dimension_semantics = [#tpu.dimension_semantics<parallel>], iteration_bounds = array<i64: 1>, scalar_prefetch = 0 : i64, scratch_operands = 0 : i64, tpu.core_type = #tpu.core_type<tc>, window_params = [{transform_indices = @transform_0, window_bounds = array<i64: 8, 128>}, {pipeline_mode = #tpu.pipeline_mode<synchronous>, transform_indices = @transform_1, window_bounds = array<i64: 128, 128>}, {pipeline_mode = #tpu.pipeline_mode<synchronous>, transform_indices = @transform_2, window_bounds = array<i64: 1, 128>}, {pipeline_mode = #tpu.pipeline_mode<synchronous>, transform_indices = @transform_3, window_bounds = array<i64: 128, 256>}, {pipeline_mode = #tpu.pipeline_mode<synchronous>, transform_indices = @transform_4, window_bounds = array<i64: 1, 256>}, {pipeline_mode = #tpu.pipeline_mode<synchronous>, transform_indices = @transform_5, window_bounds = array<i64: 256, 512>}, {pipeline_mode = #tpu.pipeline_mode<synchronous>, transform_indices = @transform_6, window_bounds = array<i64: 1, 512>}, {pipeline_mode = #tpu.pipeline_mode<synchronous>, transform_indices = @transform_7, window_bounds = array<i64: 512, 128>}, {pipeline_mode = #tpu.pipeline_mode<synchronous>, transform_indices = @transform_8, window_bounds = array<i64: 1, 128>}, {transform_indices = @transform_9, window_bounds = array<i64: 8, 128>}]} {
    %c0 = arith.constant 0 : index
    %c0_0 = arith.constant 0 : index
    %0 = vector.load %arg1[%c0, %c0_0] : memref<8x128xbf16, #tpu.memory_space<vmem>>, vector<8x128xbf16>
    %c0_1 = arith.constant 0 : index
    %c0_2 = arith.constant 0 : index
    %1 = vector.load %arg2[%c0_1, %c0_2] : memref<128x128xbf16, #tpu.memory_space<vmem>>, vector<128x128xbf16>
    %cst = arith.constant dense<0.000000e+00> : vector<8x128xf32>
    %2 = tpu.matmul %0, %1, %cst {dimension_numbers = #tpu.dot_dimension_numbers<[1], [0], [0], [1], [0, 0, 1, 1], [], []>} : vector<8x128xbf16>, vector<128x128xbf16>, vector<8x128xf32> -> vector<8x128xf32>
    %c0_3 = arith.constant 0 : index
    %c0_4 = arith.constant 0 : index
    %3 = vector.load %arg3[%c0_3, %c0_4] : memref<1x128xf32, #tpu.memory_space<vmem>>, vector<1x128xf32>
    %4 = vector.broadcast %3 : vector<1x128xf32> to vector<8x128xf32>
    %5 = arith.addf %2, %4 : vector<8x128xf32>
    %cst_5 = arith.constant 0.000000e+00 : f32
    %6 = vector.broadcast %cst_5 : f32 to vector<8x128xf32>
    %7 = arith.maximumf %5, %6 : vector<8x128xf32>
    %8 = arith.truncf %7 : vector<8x128xf32> to vector<8x128xbf16>
    %c0_6 = arith.constant 0 : index
    %c0_7 = arith.constant 0 : index
    %9 = vector.load %arg4[%c0_6, %c0_7] : memref<128x256xbf16, #tpu.memory_space<vmem>>, vector<128x256xbf16>
    %cst_8 = arith.constant dense<0.000000e+00> : vector<8x256xf32>
    %10 = tpu.matmul %8, %9, %cst_8 {dimension_numbers = #tpu.dot_dimension_numbers<[1], [0], [0], [1], [0, 0, 1, 1], [], []>} : vector<8x128xbf16>, vector<128x256xbf16>, vector<8x256xf32> -> vector<8x256xf32>
    %c0_9 = arith.constant 0 : index
    %c0_10 = arith.constant 0 : index
    %11 = vector.load %arg5[%c0_9, %c0_10] : memref<1x256xf32, #tpu.memory_space<vmem>>, vector<1x256xf32>
    %12 = vector.broadcast %11 : vector<1x256xf32> to vector<8x256xf32>
    %13 = arith.addf %10, %12 : vector<8x256xf32>
    %cst_11 = arith.constant 0.000000e+00 : f32
    %14 = vector.broadcast %cst_11 : f32 to vector<8x256xf32>
    %15 = arith.maximumf %13, %14 : vector<8x256xf32>
    %16 = arith.truncf %15 : vector<8x256xf32> to vector<8x256xbf16>
    %c0_12 = arith.constant 0 : index
    %c0_13 = arith.constant 0 : index
    %17 = vector.load %arg6[%c0_12, %c0_13] : memref<256x512xbf16, #tpu.memory_space<vmem>>, vector<256x512xbf16>
    %cst_14 = arith.constant dense<0.000000e+00> : vector<8x512xf32>
    %18 = tpu.matmul %16, %17, %cst_14 {dimension_numbers = #tpu.dot_dimension_numbers<[1], [0], [0], [1], [0, 0, 1, 1], [], []>} : vector<8x256xbf16>, vector<256x512xbf16>, vector<8x512xf32> -> vector<8x512xf32>
    %c0_15 = arith.constant 0 : index
    %c0_16 = arith.constant 0 : index
    %19 = vector.load %arg7[%c0_15, %c0_16] : memref<1x512xf32, #tpu.memory_space<vmem>>, vector<1x512xf32>
    %20 = vector.broadcast %19 : vector<1x512xf32> to vector<8x512xf32>
    %21 = arith.addf %18, %20 : vector<8x512xf32>
    %cst_17 = arith.constant 0.000000e+00 : f32
    %22 = vector.broadcast %cst_17 : f32 to vector<8x512xf32>
    %23 = arith.maximumf %21, %22 : vector<8x512xf32>
    %24 = arith.truncf %23 : vector<8x512xf32> to vector<8x512xbf16>
    %c0_18 = arith.constant 0 : index
    %c0_19 = arith.constant 0 : index
    %25 = vector.load %arg8[%c0_18, %c0_19] : memref<512x128xbf16, #tpu.memory_space<vmem>>, vector<512x128xbf16>
    %cst_20 = arith.constant dense<0.000000e+00> : vector<8x128xf32>
    %26 = tpu.matmul %24, %25, %cst_20 {dimension_numbers = #tpu.dot_dimension_numbers<[1], [0], [0], [1], [0, 0, 1, 1], [], []>} : vector<8x512xbf16>, vector<512x128xbf16>, vector<8x128xf32> -> vector<8x128xf32>
    %c0_21 = arith.constant 0 : index
    %c0_22 = arith.constant 0 : index
    %27 = vector.load %arg9[%c0_21, %c0_22] : memref<1x128xf32, #tpu.memory_space<vmem>>, vector<1x128xf32>
    %28 = vector.broadcast %27 : vector<1x128xf32> to vector<8x128xf32>
    %29 = arith.addf %26, %28 : vector<8x128xf32>
    %c0_23 = arith.constant 0 : index
    %c0_24 = arith.constant 0 : index
    %30 = vector.load %arg10[%c0_23, %c0_24] : memref<8x128xf32, #tpu.memory_space<vmem>>, vector<8x128xf32>
    tpu.vector_store %arg10[%c0_23, %c0_24], %29 {strides = array<i32>} : memref<8x128xf32, #tpu.memory_space<vmem>>, vector<8x128xf32>,
    return
  }
  func.func @transform_0(%arg0: i32) -> (i32, i32) {
    %c0_i32 = arith.constant 0 : i32
    %c0_i32_0 = arith.constant 0 : i32
    return %arg0, %c0_i32 : i32, i32
  }
  func.func @transform_1(%arg0: i32) -> (i32, i32) {
    %c0_i32 = arith.constant 0 : i32
    %c0_i32_0 = arith.constant 0 : i32
    %c0_i32_1 = arith.constant 0 : i32
    return %c0_i32, %c0_i32_0 : i32, i32
  }
  func.func @transform_2(%arg0: i32) -> (i32, i32) {
    %c0_i32 = arith.constant 0 : i32
    %c0_i32_0 = arith.constant 0 : i32
    %c0_i32_1 = arith.constant 0 : i32
    return %c0_i32, %c0_i32_0 : i32, i32
  }
  func.func @transform_3(%arg0: i32) -> (i32, i32) {
    %c0_i32 = arith.constant 0 : i32
    %c0_i32_0 = arith.constant 0 : i32
    %c0_i32_1 = arith.constant 0 : i32
    return %c0_i32, %c0_i32_0 : i32, i32
  }
  func.func @transform_4(%arg0: i32) -> (i32, i32) {
    %c0_i32 = arith.constant 0 : i32
    %c0_i32_0 = arith.constant 0 : i32
    %c0_i32_1 = arith.constant 0 : i32
    return %c0_i32, %c0_i32_0 : i32, i32
  }
  func.func @transform_5(%arg0: i32) -> (i32, i32) {
    %c0_i32 = arith.constant 0 : i32
    %c0_i32_0 = arith.constant 0 : i32
    %c0_i32_1 = arith.constant 0 : i32
    return %c0_i32, %c0_i32_0 : i32, i32
  }
  func.func @transform_6(%arg0: i32) -> (i32, i32) {
    %c0_i32 = arith.constant 0 : i32
    %c0_i32_0 = arith.constant 0 : i32
    %c0_i32_1 = arith.constant 0 : i32
    return %c0_i32, %c0_i32_0 : i32, i32
  }
  func.func @transform_7(%arg0: i32) -> (i32, i32) {
    %c0_i32 = arith.constant 0 : i32
    %c0_i32_0 = arith.constant 0 : i32
    %c0_i32_1 = arith.constant 0 : i32
    return %c0_i32, %c0_i32_0 : i32, i32
  }
  func.func @transform_8(%arg0: i32) -> (i32, i32) {
    %c0_i32 = arith.constant 0 : i32
    %c0_i32_0 = arith.constant 0 : i32
    %c0_i32_1 = arith.constant 0 : i32
    return %c0_i32, %c0_i32_0 : i32, i32
  }
  func.func @transform_9(%arg0: i32) -> (i32, i32) {
    %c0_i32 = arith.constant 0 : i32
    %c0_i32_0 = arith.constant 0 : i32
    return %arg0, %c0_i32 : i32, i32
  }
}

</mosaic_0001>

<bundles_post_ra>
// kernel: generator_forward.1
= control target key start
LH: loop header
LB: loop body
LE: loop exit
PB: predicated region body
PF: predicated region fallthrough
CT: control target
= control target key end

     0   :  { %v1502_v0 = vmov 0.0   ;;  %vm1503_vm0 = vmmov 0   ;;  %v1504_v26 = vmov 0   ;;  %s1947_s1 = inlined_call_operand.vmem [shape: bf16[128,128], index: 1, kind: input, shape index: {}]   ;;  %s1948_s3 = inlined_call_operand.vmem [shape: bf16[128,256], index: 3, kind: input, shape index: {}]   ;;  %s1949_s0 = inlined_call_operand.vmem [shape: bf16[8,128], index: 0, kind: input, shape index: {}]   ;;  %s1950_s5 = inlined_call_operand.vmem [shape: bf16[256,512], index: 5, kind: input, shape index: {}]   ;;  %s1951_s2 = inlined_call_operand.vmem [shape: f32[1,128], index: 2, kind: input, shape index: {}]   ;;  %s1952_s7 = inlined_call_operand.vmem [shape: bf16[512,128], index: 7, kind: input, shape index: {}]   ;;  %s1953_s4 = inlined_call_operand.vmem [shape: f32[1,256], index: 4, kind: input, shape index: {}]   ;;  %s1954_s6 = inlined_call_operand.vmem [shape: f32[1,512], index: 6, kind: input, shape index: {}]   ;;  %s1955_s8 = inlined_call_operand.vmem [shape: f32[1,128], index: 8, kind: input, shape index: {}]   ;;  %s1956_s9 = inlined_call_operand.vmem [shape: f32[8,128], index: 9, kind: output, shape index: {}]  }
   0x1   :  { %1319 = vmatprep.subr.bf16.mxu0 %v1502_v0  ;;  %v1342_v1 = vld [vmem:[%s1947_s1 + $0x38] sm:$0xff]   ;;  %1335 = vmatprep.mubr.msk.bf16.mxu0 %vm1503_vm0, %v1502_v0  ;;  %v1343_v2 = vld [vmem:[%s1947_s1 + $0x30] sm:$0xff]   ;;  %v1344_v3 = vld [vmem:[%s1947_s1 + $0x28] sm:$0xff]  }
   0x2   :  { %1320 = vmatpush3.bf16.msra.mxu0 %v1342_v1  ;;  %v1350_v4 = vld [vmem:[%s1948_s3 + $0x74] ss:$8 sps:$4 sm:$0xff]   ;;  %v1352_v5 = vld [vmem:[%s1948_s3 + $0x70] ss:$8 sps:$4 sm:$0xff]   ;;  %v1345_v6 = vld [vmem:[%s1947_s1 + $0x20] sm:$0xff]   ;;  %287 = vmatprep.mubr.bf16.mxu1 %v1504_v26 }
   0x3   :  { %1321 = vmatprep.subr.bf16.mxu0 %v1502_v0  ;;  %v1353_v7 = vld [vmem:[%s1948_s3 + $0x64] ss:$8 sps:$4 sm:$0xff]   ;;  %255 = vmatprep.subr.bf16.mxu1 %v1350_v4  ;;  %v1355_v8 = vld [vmem:[%s1948_s3 + $0x60] ss:$8 sps:$4 sm:$0xff]   ;;  %v1356_v9 = vld [vmem:[%s1948_s3 + $0x54] ss:$8 sps:$4 sm:$0xff]  }
   0x4   :  { %256 = vmatpush1.bf16.msra.mxu1 %v1352_v5  ;;  %v1346_v10 = vld [vmem:[%s1947_s1 + $0x18] sm:$0xff]   ;;  %v1359_v12 = vld [vmem:[%s1948_s3 + $0x44] ss:$8 sps:$4 sm:$0xff]   ;;  %v1347_v13 = vld [vmem:[%s1947_s1 + $0x10] sm:$0xff]  }
   0x5   :  { %257 = vmatprep.subr.bf16.mxu1 %v1353_v7  ;;  %v1358_v11 = vld [vmem:[%s1948_s3 + $0x50] ss:$8 sps:$4 sm:$0xff]   ;;  %v1361_v14 = vld [vmem:[%s1948_s3 + $0x40] ss:$8 sps:$4 sm:$0xff]   ;;  %v1362_v15 = vld [vmem:[%s1948_s3 + $0x34] ss:$8 sps:$4 sm:$0xff]  }
   0x6   :  { %1322 = vmatpush3.bf16.msra.mxu0 %v1343_v2  ;;  %v1348_v16 = vld [vmem:[%s1947_s1 + $0x8] sm:$0xff]   ;;  %v1364_v17 = vld [vmem:[%s1948_s3 + $0x30] ss:$8 sps:$4 sm:$0xff]   ;;  %v1349_v19 = vld [vmem:[%s1947_s1] sm:$0xff]  }
   0x7   :  { %1323 = vmatprep.subr.bf16.mxu0 %v1502_v0  ;;  %v1365_v18 = vld [vmem:[%s1948_s3 + $0x24] ss:$8 sps:$4 sm:$0xff]   ;;  %v1367_v20 = vld [vmem:[%s1948_s3 + $0x20] ss:$8 sps:$4 sm:$0xff]   ;;  %v1368_v21 = vld [vmem:[%s1948_s3 + $0x14] ss:$8 sps:$4 sm:$0xff]  }
   0x8   :  { %258 = vmatpush1.bf16.msra.mxu1 %v1355_v8  ;;  %v33_v22 = vld [vmem:[%s1949_s0] sm:$0xf]  ;;  %v1370_v23 = vld [vmem:[%s1948_s3 + $0x10] ss:$8 sps:$4 sm:$0xff]   ;;  %v1371_v24 = vld [vmem:[%s1948_s3 + $0x4] ss:$8 sps:$4 sm:$0xff]  }
   0x9   :  { %259 = vmatprep.subr.bf16.mxu1 %v1356_v9  ;;  %v1373_v25 = vld [vmem:[%s1948_s3] ss:$8 sps:$4 sm:$0xff]   ;;  %v1376_v28 = vld [vmem:[%s1950_s5 + $0xe4] ss:$16 sps:$4 sm:$0xff]   ;;  %v1379_v29 = vld [vmem:[%s1950_s5 + $0xec] ss:$16 sps:$4 sm:$0xff]  }
   0xa   :  { %1324 = vmatpush3.bf16.msra.mxu0 %v1344_v3  ;;  %v1374_v27 = vld [vmem:[%s1950_s5 + $0xe0] ss:$16 sps:$4 sm:$0xff]   ;;  %v1382_v30 = vld [vmem:[%s1950_s5 + $0xc4] ss:$16 sps:$4 sm:$0xff]   ;;  %v1377_v62 = vld [vmem:[%s1950_s5 + $0xe8] ss:$16 sps:$4 sm:$0xff]  }
   0xb   :  { %1325 = vmatprep.subr.bf16.mxu0 %v1502_v0  ;;  %v1380_v31 = vld [vmem:[%s1950_s5 + $0xc0] ss:$16 sps:$4 sm:$0xff]   ;;  %v1388_v32 = vld [vmem:[%s1950_s5 + $0xa4] ss:$16 sps:$4 sm:$0xff]   ;;  %v1383_v2 = vld [vmem:[%s1950_s5 + $0xc8] ss:$16 sps:$4 sm:$0xff]  }
   0xc   :  { %260 = vmatpush1.bf16.msra.mxu1 %v1358_v11  ;;  %v1386_v33 = vld [vmem:[%s1950_s5 + $0xa0] ss:$16 sps:$4 sm:$0xff]   ;;  %v1394_v34 = vld [vmem:[%s1950_s5 + $0x84] ss:$16 sps:$4 sm:$0xff]   ;;  %v1391_v3 = vld [vmem:[%s1950_s5 + $0xac] ss:$16 sps:$4 sm:$0xff]  }
   0xd   :  { %261 = vmatprep.subr.bf16.mxu1 %v1359_v12  ;;  %v1392_v35 = vld [vmem:[%s1950_s5 + $0x80] ss:$16 sps:$4 sm:$0xff]   ;;  %v1400_v36 = vld [vmem:[%s1950_s5 + $0x64] ss:$16 sps:$4 sm:$0xff]   ;;  %v1389_v4 = vld [vmem:[%s1950_s5 + $0xa8] ss:$16 sps:$4 sm:$0xff]  }
   0xe   :  { %1326 = vmatpush3.bf16.msra.mxu0 %v1345_v6  ;;  %v1398_v37 = vld [vmem:[%s1950_s5 + $0x60] ss:$16 sps:$4 sm:$0xff]   ;;  %v1406_v38 = vld [vmem:[%s1950_s5 + $0x44] ss:$16 sps:$4 sm:$0xff]   ;;  %v1397_v5 = vld [vmem:[%s1950_s5 + $0x8c] ss:$16 sps:$4 sm:$0xff]  }
   0xf   :  { %1327 = vmatprep.subr.bf16.mxu0 %v1502_v0  ;;  %v1404_v39 = vld [vmem:[%s1950_s5 + $0x40] ss:$16 sps:$4 sm:$0xff]   ;;  %v1412_v40 = vld [vmem:[%s1950_s5 + $0x24] ss:$16 sps:$4 sm:$0xff]   ;;  %v1395_v6 = vld [vmem:[%s1950_s5 + $0x88] ss:$16 sps:$4 sm:$0xff]  }
  0x10   :  { %262 = vmatpush1.bf16.msra.mxu1 %v1361_v14  ;;  %v1410_v41 = vld [vmem:[%s1950_s5 + $0x20] ss:$16 sps:$4 sm:$0xff]   ;;  %v1418_v42 = vld [vmem:[%s1950_s5 + $0x4] ss:$16 sps:$4 sm:$0xff]   ;;  %v1403_v7 = vld [vmem:[%s1950_s5 + $0x6c] ss:$16 sps:$4 sm:$0xff]  }
  0x11   :  { %263 = vmatprep.subr.bf16.mxu1 %v1362_v15  ;;  %v1416_v43 = vld [vmem:[%s1950_s5] ss:$16 sps:$4 sm:$0xff]   ;;  %v1424_v44 = vld [vmem:[%s1950_s5 + $0x1e4] ss:$16 sps:$4 sm:$0xff]   ;;  %v1401_v8 = vld [vmem:[%s1950_s5 + $0x68] ss:$16 sps:$4 sm:$0xff]  }
  0x12   :  { %1328 = vmatpush3.bf16.msra.mxu0 %v1346_v10  ;;  %v1422_v45 = vld [vmem:[%s1950_s5 + $0x1e0] ss:$16 sps:$4 sm:$0xff]   ;;  %v1430_v46 = vld [vmem:[%s1950_s5 + $0x1c4] ss:$16 sps:$4 sm:$0xff]   ;;  %v1409_v9 = vld [vmem:[%s1950_s5 + $0x4c] ss:$16 sps:$4 sm:$0xff]  }
  0x13   :  { %1329 = vmatprep.subr.bf16.mxu0 %v1502_v0  ;;  %v1428_v47 = vld [vmem:[%s1950_s5 + $0x1c0] ss:$16 sps:$4 sm:$0xff]   ;;  %v1436_v48 = vld [vmem:[%s1950_s5 + $0x1a4] ss:$16 sps:$4 sm:$0xff]   ;;  %v1407_v10 = vld [vmem:[%s1950_s5 + $0x48] ss:$16 sps:$4 sm:$0xff]  }
  0x14   :  { %264 = vmatpush1.bf16.msra.mxu1 %v1364_v17  ;;  %v1434_v49 = vld [vmem:[%s1950_s5 + $0x1a0] ss:$16 sps:$4 sm:$0xff]   ;;  %v1442_v50 = vld [vmem:[%s1950_s5 + $0x184] ss:$16 sps:$4 sm:$0xff]   ;;  %v1415_v11 = vld [vmem:[%s1950_s5 + $0x2c] ss:$16 sps:$4 sm:$0xff]  }
  0x15   :  { %265 = vmatprep.subr.bf16.mxu1 %v1365_v18  ;;  %v1440_v51 = vld [vmem:[%s1950_s5 + $0x180] ss:$16 sps:$4 sm:$0xff]   ;;  %v1448_v52 = vld [vmem:[%s1950_s5 + $0x164] ss:$16 sps:$4 sm:$0xff]   ;;  %v1413_v12 = vld [vmem:[%s1950_s5 + $0x28] ss:$16 sps:$4 sm:$0xff]  }
  0x16   :  { %1330 = vmatpush3.bf16.msra.mxu0 %v1347_v13  ;;  %v1446_v53 = vld [vmem:[%s1950_s5 + $0x160] ss:$16 sps:$4 sm:$0xff]   ;;  %v1454_v54 = vld [vmem:[%s1950_s5 + $0x144] ss:$16 sps:$4 sm:$0xff]   ;;  %v1421_v13 = vld [vmem:[%s1950_s5 + $0xc] ss:$16 sps:$4 sm:$0xff]  }
  0x17   :  { %1331 = vmatprep.subr.bf16.mxu0 %v1502_v0  ;;  %v1452_v55 = vld [vmem:[%s1950_s5 + $0x140] ss:$16 sps:$4 sm:$0xff]   ;;  %v1419_v14 = vld [vmem:[%s1950_s5 + $0x8] ss:$16 sps:$4 sm:$0xff]   ;;  %v1427_v15 = vld [vmem:[%s1950_s5 + $0x1ec] ss:$16 sps:$4 sm:$0xff]  }
  0x18   :  { %266 = vmatpush1.bf16.msra.mxu1 %v1367_v20  ;;  %v1144_v56 = vld [vmem:[%s1951_s2] ss:$0 sm:$0xff]  ;;  %v1433_v17 = vld [vmem:[%s1950_s5 + $0x1cc] ss:$16 sps:$4 sm:$0xff]   ;;  %v1431_v18 = vld [vmem:[%s1950_s5 + $0x1c8] ss:$16 sps:$4 sm:$0xff]  }
  0x19   :  { %267 = vmatprep.subr.bf16.mxu1 %v1368_v21  ;;  %v1437_v20 = vld [vmem:[%s1950_s5 + $0x1a8] ss:$16 sps:$4 sm:$0xff]   ;;  %v1445_v21 = vld [vmem:[%s1950_s5 + $0x18c] ss:$16 sps:$4 sm:$0xff]  }
  0x1a   :  { %1332 = vmatpush3.bf16.msra.mxu0 %v1348_v16  ;;  %v1425_v16 = vld [vmem:[%s1950_s5 + $0x1e8] ss:$16 sps:$4 sm:$0xff]  }
  0x1b   :  { %1333 = vmatprep.subr.bf16.mxu0 %v1502_v0  ;;  %v1385_v0 = vld [vmem:[%s1950_s5 + $0xcc] ss:$16 sps:$4 sm:$0xff]   ;;  %v1455_v26 = vld [vmem:[%s1950_s5 + $0x148] ss:$16 sps:$4 sm:$0xff]  }
  0x1c   :  { %268 = vmatpush1.bf16.msra.mxu1 %v1370_v23  ;;  %v1451_v23 = vld [vmem:[%s1950_s5 + $0x16c] ss:$16 sps:$4 sm:$0xff]  }
  0x1d   :  { %269 = vmatprep.subr.bf16.mxu1 %v1371_v24  ;;  %v1449_v24 = vld [vmem:[%s1950_s5 + $0x168] ss:$16 sps:$4 sm:$0xff]  }
  0x1e   :  { %1334 = vmatpush3.bf16.msra.mxu0 %v1349_v19  ;;  %v1439_v19 = vld [vmem:[%s1950_s5 + $0x1ac] ss:$16 sps:$4 sm:$0xff]  }
  0x1f   :  { %706 = vmatprep.subr.bf16.mxu0 %v1376_v28  ;;  %v1463_v28 = vld [vmem:[%s1950_s5 + $0x12c] ss:$16 sps:$4 sm:$0xff]  }
  0x20   :  { %270 = vmatpush1.bf16.msra.mxu1 %v1373_v25  ;;  %v1457_v25 = vld [vmem:[%s1950_s5 + $0x14c] ss:$16 sps:$4 sm:$0xff]  }
  0x21   :  { %1336 = vmatmul.mubr.bf16.vlgmr.msra.gmra.mxu0 %v33_v22  ;;  %747 = vmatprep.subr.bf16.mxu1 %v1379_v29  ;;  %v1443_v22 = vld [vmem:[%s1950_s5 + $0x188] ss:$16 sps:$4 sm:$0xff]   ;;  %v1458_v29 = vld [vmem:[%s1950_s5 + $0x120] ss:$16 sps:$4 sm:$0xff]  }
  0x22   :  { %707 = vmatpush1.bf16.msra.mxu0 %v1374_v27  ;;  %v1460_v27 = vld [vmem:[%s1950_s5 + $0x124] ss:$16 sps:$4 sm:$0xff]  }
  0x23   :  { %708 = vmatprep.subr.bf16.mxu0 %v1382_v30  ;;  %v1461_v30 = vld [vmem:[%s1950_s5 + $0x128] ss:$16 sps:$4 sm:$0xff]  }
  0x26   :  { %709 = vmatpush1.bf16.msra.mxu0 %v1380_v31  ;;  %v1466_v31 = vld [vmem:[%s1950_s5 + $0x104] ss:$16 sps:$4 sm:$0xff]  }
  0x27   :  { %710 = vmatprep.subr.bf16.mxu0 %v1388_v32  ;;  %v1469_v32 = vld [vmem:[%s1950_s5 + $0x10c] ss:$16 sps:$4 sm:$0xff]  }
  0x2a   :  { %711 = vmatpush1.bf16.msra.mxu0 %v1386_v33  ;;  %v1464_v33 = vld [vmem:[%s1950_s5 + $0x100] ss:$16 sps:$4 sm:$0xff]  }
  0x2b   :  { %712 = vmatprep.subr.bf16.mxu0 %v1394_v34  ;;  %v1467_v34 = vld [vmem:[%s1950_s5 + $0x108] ss:$16 sps:$4 sm:$0xff]  }
  0x2e   :  { %713 = vmatpush1.bf16.msra.mxu0 %v1392_v35  ;;  %v1470_v35 = vld [vmem:[%s1952_s7 + $0x78] sm:$0xff]  }
  0x2f   :  { %714 = vmatprep.subr.bf16.mxu0 %v1400_v36  ;;  %v1471_v36 = vld [vmem:[%s1952_s7 + $0xf8] sm:$0xff]  }
  0x32   :  { %715 = vmatpush1.bf16.msra.mxu0 %v1398_v37  ;;  %v165_v37 = vlaneseq }
  0x33   :  { %716 = vmatprep.subr.bf16.mxu0 %v1406_v38 }
  0x34   :  { %v1831_v38 = vshrl.u32 %v165_v37, 7 }
  0x36   :  { %717 = vmatpush1.bf16.msra.mxu0 %v1404_v39  ;;  %v167_v39 = vsub.s32 0, %v1831_v38 }
  0x37   :  { %718 = vmatprep.subr.bf16.mxu0 %v1412_v40  ;;  %v163_v40 = vld [vmem:[%s1953_s4] sm:$0x3] }
  0x3a   :  { %719 = vmatpush1.bf16.msra.mxu0 %v1410_v41  ;;  %v171_v41 = vsub.s32 1, %v1831_v38 }
  0x3b   :  { %720 = vmatprep.subr.bf16.mxu0 %v1418_v42  ;;  %v168_v42 = vrot.slane %v163_v40, %v167_v39 }
  0x3e   :  { %721 = vmatpush1.bf16.msra.mxu0 %v1416_v43  ;;  %v172_v43 = vrot.slane %v163_v40, %v171_v41 }
  0x3f   :  { %722 = vmatprep.subr.bf16.mxu0 %v1424_v44 }
  0x42   :  { %723 = vmatpush2.bf16.msra.mxu0 %v1422_v45 }
  0x43   :  { %724 = vmatprep.subr.bf16.mxu0 %v1430_v46 }
  0x46   :  { %725 = vmatpush2.bf16.msra.mxu0 %v1428_v47 }
  0x47   :  { %726 = vmatprep.subr.bf16.mxu0 %v1436_v48 }
  0x4a   :  { %727 = vmatpush2.bf16.msra.mxu0 %v1434_v49 }
  0x4b   :  { %728 = vmatprep.subr.bf16.mxu0 %v1442_v50 }
  0x4e   :  { %729 = vmatpush2.bf16.msra.mxu0 %v1440_v51 }
  0x4f   :  { %730 = vmatprep.subr.bf16.mxu0 %v1448_v52 }
  0x52   :  { %731 = vmatpush2.bf16.msra.mxu0 %v1446_v53  ;;  %v1472_v53 = vld [vmem:[%s1952_s7 + $0x38] sm:$0xff]  }
  0x53   :  { %732 = vmatprep.subr.bf16.mxu0 %v1454_v54  ;;  %v1473_v54 = vld [vmem:[%s1952_s7 + $0xb8] sm:$0xff]  }
  0x56   :  { %733 = vmatpush2.bf16.msra.mxu0 %v1452_v55 }
  0x57   :  { %734 = vmatprep.subr.bf16.mxu0 %v1460_v27 }
  0x5a   :  { %735 = vmatpush2.bf16.msra.mxu0 %v1458_v29 }
  0x5b   :  { %736 = vmatprep.subr.bf16.mxu0 %v1466_v31 }
  0x5e   :  { %737 = vmatpush2.bf16.msra.mxu0 %v1464_v33 }
  0x5f   :  { %1275 = vmatprep.subr.bf16.mxu0 %v1470_v35 }
  0xe1   :  { %v139_v57 = vpop.f32.mrf.mxu0 }
  0xe2   :  { %v140_v58 = vadd.f32 %v1144_v56, %v139_v57  ;;  %v1474_v56 = vld [vmem:[%s1952_s7 + $0x70] sm:$0xff]  }
  0xe3   :  { %v1337_v59 = vpop.f32.mrf.mxu0  ;;  %v1475_v57 = vld [vmem:[%s1952_s7 + $0xf0] sm:$0xff]  }
  0xe4   :  { %v145_v60 = vmax.f32 %v140_v58, 0.0  ;;  %v1476_v58 = vld [vmem:[%s1952_s7 + $0x30] sm:$0xff]  }
  0xe5   :  { %v142_v61 = vpop.f32.mrf.mxu0  ;;  %v1477_v59 = vld [vmem:[%s1952_s7 + $0xb0] sm:$0xff]  }
  0xe6   :  { %v146_v63 = vpack.c.bf16 %v145_v60, %v145_v60  ;;  %v1478_v60 = vld [vmem:[%s1952_s7 + $0x68] sm:$0xff]  }
  0xe7   :  { %v1338_v1 = vpop.f32.mrf.mxu0  ;;  %v1479_v61 = vld [vmem:[%s1952_s7 + $0xe8] sm:$0xff]  }
  0xe8   :  { %288 = vmatmul.mubr.bf16.vlgmr.msra.gmra.mxu1 %v146_v63  ;;  %v1481_v63 = vld [vmem:[%s1952_s7 + $0xa8] sm:$0xff]   ;;  %v1483_v1 = vld [vmem:[%s1952_s7 + $0xe0] sm:$0xff]  }
  0xe9   :  { %748 = vmatpush1.bf16.msra.mxu1 %v1377_v62  ;;  %v1480_v62 = vld [vmem:[%s1952_s7 + $0x28] sm:$0xff]  }
  0xea   :  { %749 = vmatprep.subr.bf16.mxu1 %v1385_v0  ;;  %v1482_v0 = vld [vmem:[%s1952_s7 + $0x60] sm:$0xff]  }
  0xed   :  { %750 = vmatpush1.bf16.msra.mxu1 %v1383_v2  ;;  %v1484_v2 = vld [vmem:[%s1952_s7 + $0x20] sm:$0xff]  }
  0xee   :  { %751 = vmatprep.subr.bf16.mxu1 %v1391_v3  ;;  %v1485_v3 = vld [vmem:[%s1952_s7 + $0xa0] sm:$0xff]  }
  0xf1   :  { %752 = vmatpush1.bf16.msra.mxu1 %v1389_v4  ;;  %v1486_v4 = vld [vmem:[%s1952_s7 + $0x58] sm:$0xff]  }
  0xf2   :  { %753 = vmatprep.subr.bf16.mxu1 %v1397_v5  ;;  %v1487_v5 = vld [vmem:[%s1952_s7 + $0xd8] sm:$0xff]  }
  0xf5   :  { %754 = vmatpush1.bf16.msra.mxu1 %v1395_v6  ;;  %v1488_v6 = vld [vmem:[%s1952_s7 + $0x18] sm:$0xff]  }
  0xf6   :  { %755 = vmatprep.subr.bf16.mxu1 %v1403_v7  ;;  %v1489_v7 = vld [vmem:[%s1952_s7 + $0x98] sm:$0xff]  }
  0xf9   :  { %756 = vmatpush1.bf16.msra.mxu1 %v1401_v8  ;;  %v1490_v8 = vld [vmem:[%s1952_s7 + $0x50] sm:$0xff]  }
  0xfa   :  { %757 = vmatprep.subr.bf16.mxu1 %v1409_v9  ;;  %v1491_v9 = vld [vmem:[%s1952_s7 + $0xd0] sm:$0xff]  }
  0xfd   :  { %758 = vmatpush1.bf16.msra.mxu1 %v1407_v10  ;;  %v1492_v10 = vld [vmem:[%s1952_s7 + $0x10] sm:$0xff]  }
  0xfe   :  { %759 = vmatprep.subr.bf16.mxu1 %v1415_v11  ;;  %v1493_v11 = vld [vmem:[%s1952_s7 + $0x90] sm:$0xff]  }
 0x101   :  { %760 = vmatpush1.bf16.msra.mxu1 %v1413_v12  ;;  %v1494_v12 = vld [vmem:[%s1952_s7 + $0x48] sm:$0xff]  }
 0x102   :  { %761 = vmatprep.subr.bf16.mxu1 %v1421_v13  ;;  %v1495_v13 = vld [vmem:[%s1952_s7 + $0xc8] sm:$0xff]  }
 0x105   :  { %762 = vmatpush1.bf16.msra.mxu1 %v1419_v14  ;;  %v1496_v14 = vld [vmem:[%s1952_s7 + $0x8] sm:$0xff]  }
 0x106   :  { %763 = vmatprep.subr.bf16.mxu1 %v1427_v15  ;;  %v1497_v15 = vld [vmem:[%s1952_s7 + $0x88] sm:$0xff]  }
 0x109   :  { %764 = vmatpush2.bf16.msra.mxu1 %v1425_v16  ;;  %v1498_v16 = vld [vmem:[%s1952_s7 + $0x40] sm:$0xff]  }
 0x10a   :  { %765 = vmatprep.subr.bf16.mxu1 %v1433_v17  ;;  %v1499_v17 = vld [vmem:[%s1952_s7 + $0xc0] sm:$0xff]  }
 0x10d   :  { %766 = vmatpush2.bf16.msra.mxu1 %v1431_v18  ;;  %v1500_v18 = vld [vmem:[%s1952_s7] sm:$0xff]  }
 0x10e   :  { %767 = vmatprep.subr.bf16.mxu1 %v1439_v19  ;;  %v1501_v19 = vld [vmem:[%s1952_s7 + $0x80] sm:$0xff]  }
 0x111   :  { %768 = vmatpush2.bf16.msra.mxu1 %v1437_v20  ;;  %v376_v20 = vsub.s32 2, %v1831_v38 }
 0x112   :  { %769 = vmatprep.subr.bf16.mxu1 %v1445_v21  ;;  %v364_v21 = vld [vmem:[%s1954_s6] sm:$0xf] }
 0x115   :  { %770 = vmatpush2.bf16.msra.mxu1 %v1443_v22  ;;  %v380_v22 = vsub.s32 3, %v1831_v38 }
 0x116   :  { %771 = vmatprep.subr.bf16.mxu1 %v1451_v23  ;;  %v369_v23 = vrot.slane %v364_v21, %v167_v39 }
 0x119   :  { %772 = vmatpush2.bf16.msra.mxu1 %v1449_v24  ;;  %v377_v24 = vrot.slane %v364_v21, %v376_v20 }
 0x11a   :  { %773 = vmatprep.subr.bf16.mxu1 %v1457_v25  ;;  %v373_v25 = vrot.slane %v364_v21, %v171_v41 }
 0x11d   :  { %774 = vmatpush2.bf16.msra.mxu1 %v1455_v26  ;;  %v381_v26 = vrot.slane %v364_v21, %v380_v22 }
 0x11e   :  { %775 = vmatprep.subr.bf16.mxu1 %v1463_v28 }
 0x121   :  { %776 = vmatpush2.bf16.msra.mxu1 %v1461_v30 }
 0x122   :  { %777 = vmatprep.subr.bf16.mxu1 %v1469_v32 }
 0x125   :  { %778 = vmatpush2.bf16.msra.mxu1 %v1467_v34 }
 0x126   :  { %1297 = vmatprep.subr.bf16.mxu1 %v1471_v36 }
 0x1a8   :  { %v289_v44 = vpop.f32.mrf.mxu1 }
 0x1a9   :  { %v290_v45 = vadd.f32 %v289_v44, %v168_v42 }
 0x1aa   :  { %v291_v46 = vpop.f32.mrf.mxu1 }
 0x1ab   :  { %v292_v47 = vadd.f32 %v291_v46, %v172_v43  ;;  %v296_v48 = vmax.f32 %v290_v45, 0.0 }
 0x1ac   :  { %v293_v49 = vpop.f32.mrf.mxu1 }
 0x1ad   :  { %v297_v50 = vmax.f32 %v292_v47, 0.0  ;;  %v298_v55 = vpack.c.bf16 %v296_v48, %v296_v48  ;;  %v1233_v49 = vld [vmem:[%s1955_s8] ss:$0 sm:$0xff] }
 0x1ae   :  { %v294_v51 = vpop.f32.mrf.mxu1 }
 0x1af   :  { %v299_v52 = vpack.c.bf16 %v297_v50, %v297_v50 }
 0x1b1   :  { %738 = vmatprep.mubr.bf16.mxu0 %v299_v52  ;;  %779 = vmatprep.mubr.bf16.mxu1 %v299_v52 }
 0x1b2   :  { %739 = vmatmul.mubr.bf16.vlgmr.msra.gmra.mxu0 %v298_v55  ;;  %780 = vmatmul.mubr.bf16.vlgmr.msra.gmra.mxu1 %v298_v55 }
 0x1b3   :  { %1276 = vmatpush3.bf16.msra.mxu0 %v1472_v53  ;;  %1298 = vmatpush3.bf16.msra.mxu1 %v1473_v54 }
 0x1b4   :  { %1277 = vmatprep.subr.bf16.mxu0 %v1474_v56  ;;  %1299 = vmatprep.subr.bf16.mxu1 %v1475_v57 }
 0x1b7   :  { %1278 = vmatpush3.bf16.msra.mxu0 %v1476_v58  ;;  %1300 = vmatpush3.bf16.msra.mxu1 %v1477_v59 }
 0x1b8   :  { %1279 = vmatprep.subr.bf16.mxu0 %v1478_v60  ;;  %1301 = vmatprep.subr.bf16.mxu1 %v1479_v61 }
 0x1bb   :  { %1280 = vmatpush3.bf16.msra.mxu0 %v1480_v62  ;;  %1302 = vmatpush3.bf16.msra.mxu1 %v1481_v63 }
 0x1bc   :  { %1281 = vmatprep.subr.bf16.mxu0 %v1482_v0  ;;  %1303 = vmatprep.subr.bf16.mxu1 %v1483_v1 }
 0x1bf   :  { %1282 = vmatpush3.bf16.msra.mxu0 %v1484_v2  ;;  %1304 = vmatpush3.bf16.msra.mxu1 %v1485_v3 }
 0x1c0   :  { %1283 = vmatprep.subr.bf16.mxu0 %v1486_v4  ;;  %1305 = vmatprep.subr.bf16.mxu1 %v1487_v5 }
 0x1c3   :  { %1284 = vmatpush3.bf16.msra.mxu0 %v1488_v6  ;;  %1306 = vmatpush3.bf16.msra.mxu1 %v1489_v7 }
 0x1c4   :  { %1285 = vmatprep.subr.bf16.mxu0 %v1490_v8  ;;  %1307 = vmatprep.subr.bf16.mxu1 %v1491_v9 }
 0x1c7   :  { %1286 = vmatpush3.bf16.msra.mxu0 %v1492_v10  ;;  %1308 = vmatpush3.bf16.msra.mxu1 %v1493_v11 }
 0x1c8   :  { %1287 = vmatprep.subr.bf16.mxu0 %v1494_v12  ;;  %1309 = vmatprep.subr.bf16.mxu1 %v1495_v13 }
 0x1cb   :  { %1288 = vmatpush3.bf16.msra.mxu0 %v1496_v14  ;;  %1310 = vmatpush3.bf16.msra.mxu1 %v1497_v15 }
 0x1cc   :  { %1289 = vmatprep.subr.bf16.mxu0 %v1498_v16  ;;  %1311 = vmatprep.subr.bf16.mxu1 %v1499_v17 }
 0x1cf   :  { %1290 = vmatpush3.bf16.msra.mxu0 %v1500_v18  ;;  %1312 = vmatpush3.bf16.msra.mxu1 %v1501_v19 }
 0x272   :  { %v740_v27 = vpop.f32.mrf.mxu0  ;;  %v781_v28 = vpop.f32.mrf.mxu1 }
 0x273   :  { %v741_v29 = vadd.f32 %v740_v27, %v369_v23  ;;  %v782_v30 = vadd.f32 %v781_v28, %v377_v24 }
 0x274   :  { %v742_v31 = vpop.f32.mrf.mxu0  ;;  %v783_v32 = vpop.f32.mrf.mxu1 }
 0x275   :  { %v743_v33 = vadd.f32 %v742_v31, %v373_v25  ;;  %v784_v34 = vadd.f32 %v783_v32, %v381_v26  ;;  %v788_v35 = vmax.f32 %v741_v29, 0.0  ;;  %v790_v36 = vmax.f32 %v782_v30, 0.0 }
 0x276   :  { %v744_v37 = vpop.f32.mrf.mxu0  ;;  %v785_v40 = vpop.f32.mrf.mxu1 }
 0x277   :  { %v789_v42 = vmax.f32 %v743_v33, 0.0  ;;  %v791_v43 = vmax.f32 %v784_v34, 0.0  ;;  %v792_v41 = vpack.c.bf16 %v788_v35, %v788_v35  ;;  %v794_v46 = vpack.c.bf16 %v790_v36, %v790_v36 }
 0x278   :  { %v745_v39 = vpop.f32.mrf.mxu0  ;;  %v786_v44 = vpop.f32.mrf.mxu1 }
 0x279   :  { %v793_v45 = vpack.c.bf16 %v789_v42, %v789_v42  ;;  %v795_v38 = vpack.c.bf16 %v791_v43, %v791_v43 }
 0x27b   :  { %1091 = vmatprep.mubr.bf16.mxu0 %v793_v45  ;;  %1131 = vmatprep.mubr.bf16.mxu1 %v795_v38 }
 0x27c   :  { %1092 = vmatmul.mubr.bf16.vlgmr.msra.gmra.mxu0 %v792_v41  ;;  %1132 = vmatmul.mubr.bf16.vlgmr.msra.gmra.mxu1 %v794_v46 }
 0x33c   :  { %v1291_v47 = vpop.f32.mrf.mxu0  ;;  %v1313_v48 = vpop.f32.mrf.mxu1 }
 0x33e   :  { %v1292_v50 = vpop.f32.mrf.mxu0  ;;  %v1314_v51 = vpop.f32.mrf.mxu1 }
 0x33f   :  { %v1293_v52 = vadd.f32 %v1292_v50, %v1291_v47  ;;  %v1315_v56 = vadd.f32 %v1314_v51, %v1313_v48 }
 0x340   :  { %v1294_v53 = vpop.f32.mrf.mxu0  ;;  %v1316_v54 = vpop.f32.mrf.mxu1 }
 0x341   :  { %v1094_v55 = vadd.f32 %v1293_v52, %v1233_v49 }
 0x342   :  { %v1295_v57 = vpop.f32.mrf.mxu0  ;;  %v1317_v58 = vpop.f32.mrf.mxu1 }
 0x343   :  { %v1134_v59 = vadd.f32 %v1315_v56, %v1094_v55 }
 0x345   :  { %1139 = vst [vmem:[%s1956_s9] sm:$0xff] %v1134_v59 }

</bundles_post_ra>
